<compile_context>
chip_gen: v7x
topology: tpu7x:2x2x1
jax: 0.10.0
libtpu: 0.0.40
codegen_flags: <defaults>
</compile_context>

<pallas_src>
import jax
import jax.numpy as jnp
from jax.experimental import pallas as pl
from jax.experimental.pallas import tpu as pltpu

IN_FEATURES = 21 * 79          # 1659
H1 = 256
H2 = 64
OUT = 1


def critic_kernel(x_ref, w1_ref, b1_ref, w2_ref, b2_ref, w3_ref, b3_ref, o_ref):
    # x: (tm, 1659) f32 ; w1: (1659, 256) bf16 ; w2: (256, 64) bf16
    # b1: (1, 256) f32 ; b2: (1, 64) f32 ; w3: (8, 64) f32 (row 0 real, rest 0)
    # b3: (1, 1) f32 ; o: (1, tm) f32
    x = x_ref[...].astype(jnp.bfloat16)                                  # cast in-register
    h1 = jnp.tanh(
        jnp.dot(x, w1_ref[...], preferred_element_type=jnp.float32) + b1_ref[...]
    )                                                                    # (tm, 256) f32
    h2 = jnp.tanh(
        jnp.dot(h1.astype(jnp.bfloat16), w2_ref[...],
                preferred_element_type=jnp.float32) + b2_ref[...]
    )                                                                    # (tm, 64) f32
    # l3 as an NT matmul: (8, 64) . (tm, 64)^T -> (8, tm); row 0 is the real
    # output row (lane-dense), rows 1..7 come from zero-padded w3.
    l3 = jax.lax.dot_general(
        w3_ref[...], h2,
        dimension_numbers=(((1,), (1,)), ((), ())),
        preferred_element_type=jnp.float32)                              # (8, tm) f32
    o_ref[...] = l3[0:1, :] + b3_ref[...]                                # (1, tm) f32


def _choose_tiling(batch):
    """Pick (tm, grid).

    tm is a multiple of 128 whenever grid > 1 (keeps the (1, tm) lane-dense
    output block legal); batches <= 128 use one exact-size block (block dims
    equal to the full array dims are always legal).  Candidates minimize tail
    waste, then prefer grid >= 2 (megacore), then the largest tile."""
    if batch <= 128:
        return batch, 1
    best = None
    for tm in (1024, 512, 256, 128):
        grid = pl.cdiv(batch, tm)
        waste = grid * tm - batch
        key = (waste, 0 if grid >= 2 else 1, -tm)
        if best is None or key < best[0]:
            best = (key, tm, grid)
    return best[1], best[2]


def prepare_kernel_params(params):
    """Convert f32 logical params into the layout/dtypes the kernel wants."""
    w3_row = params["w3"].reshape(1, H2).astype(jnp.float32)
    w3_pad = jnp.zeros((8, H2), jnp.float32).at[0:1].set(w3_row)   # sublane-aligned
    return {
        "w1": params["w1"].astype(jnp.bfloat16),                   # (1659, 256) bf16
        "b1": params["b1"].astype(jnp.float32),                    # (1, 256)
        "w2": params["w2"].astype(jnp.bfloat16),                   # (256, 64) bf16
        "b2": params["b2"].astype(jnp.float32),                    # (1, 64)
        "w3": w3_pad,                                              # (8, 64) f32
        "b3": params["b3"].reshape(1, 1).astype(jnp.float32),      # (1, 1)
    }


def minihack_critic_forward(state, kparams):
    """state: (..., 21, 79). Returns (..., 1) float32."""
    lead = state.shape[:-2]
    x = state.reshape((-1, IN_FEATURES)).astype(jnp.float32)       # (B, 1659), no pad/copy pass
    B = x.shape[0]
    tm, grid = _choose_tiling(B)

    const = lambda i: (0, 0)

    out = pl.pallas_call(
        critic_kernel,
        out_shape=jax.ShapeDtypeStruct((1, grid * tm), jnp.float32),
        grid_spec=pltpu.PrefetchScalarGridSpec(
            num_scalar_prefetch=0,
            grid=(grid,),
            in_specs=[
                pl.BlockSpec((tm, IN_FEATURES), lambda i: (i, 0)),  # x: streamed, partial tail OK
                pl.BlockSpec((IN_FEATURES, H1), const),             # weights: VMEM-resident
                pl.BlockSpec((1, H1), const),
                pl.BlockSpec((H1, H2), const),
                pl.BlockSpec((1, H2), const),
                pl.BlockSpec((8, H2), const),
                pl.BlockSpec((1, 1), const),
            ],
            out_specs=pl.BlockSpec((1, tm), lambda i: (0, i)),       # lane-dense output row
        ),
        compiler_params=pltpu.CompilerParams(
            dimension_semantics=("parallel",),        # megacore sharding on v7x
            vmem_limit_bytes=48 * 1024 * 1024,        # fits tm=1024 f32 x-tiles, < v7x 64 MiB
        ),
    )(
        x,
        kparams["w1"], kparams["b1"],
        kparams["w2"], kparams["b2"],
        kparams["w3"], kparams["b3"],
    )
    # Out-of-range lanes (tail of the last partial block) hold garbage; slice them off.
    return out[0, :B].reshape(lead + (OUT,))


def init_params(key):
    """Deterministic init mimicking nn.Linear's U(-1/sqrt(fan_in), 1/sqrt(fan_in)).

    Logical (f32) layout: w: (in, out), b: (1, out)."""
    def linear(key, fan_in, fan_out):
        kw, kb = jax.random.split(key)
        bound = 1.0 / jnp.sqrt(float(fan_in))
        w = jax.random.uniform(kw, (fan_in, fan_out), jnp.float32, -bound, bound)
        b = jax.random.uniform(kb, (1, fan_out), jnp.float32, -bound, bound)
        return w, b

    k1, k2, k3 = jax.random.split(key, 3)
    w1, b1 = linear(k1, IN_FEATURES, H1)
    w2, b2 = linear(k2, H1, H2)
    w3, b3 = linear(k3, H2, OUT)
    return {"w1": w1, "b1": b1, "w2": w2, "b2": b2, "w3": w3, "b3": b3}


def reference_forward(state, params):
    x = state.reshape((-1, IN_FEATURES)).astype(jnp.float32)
    h1 = jnp.tanh(x @ params["w1"] + params["b1"])
    h2 = jnp.tanh(h1 @ params["w2"] + params["b2"])
    return (h2 @ params["w3"] + params["b3"]).reshape(state.shape[:-2] + (OUT,))


# TODO(synk): cnn=True branch (ConvBase: conv2d+relu+maxpool stack) is not implemented;
# this kernel covers the module's default cnn=False path.

if __name__ == "__main__":
    key = jax.random.PRNGKey(0)
    kp, kx1, kx2 = jax.random.split(key, 3)

    params = init_params(kp)
    kparams = prepare_kernel_params(params)

    # Small batch of MiniHack observations: (batch=2, 21, 79).
    state = jax.random.normal(kx1, (2, 21, 79), jnp.float32)
    out = jax.block_until_ready(minihack_critic_forward(state, kparams))
    ref = reference_forward(state, params)
    assert out.shape == (2, 1)
    assert jnp.allclose(out, ref, atol=3e-2, rtol=3e-2), (out, ref)

    # Second check: exercises grid > 1 and a partial (unpadded) tail block.
    state2 = jax.random.normal(kx2, (300, 21, 79), jnp.float32)
    out2 = jax.block_until_ready(minihack_critic_forward(state2, kparams))
    ref2 = reference_forward(state2, params)
    assert out2.shape == (300, 1)
    assert jnp.allclose(out2, ref2, atol=3e-2, rtol=3e-2)

    print("KERNEL_OK")
</pallas_src>

<mosaic_0001>
module attributes {stable_mosaic.version = 11 : i64} {
  func.func @critic_kernel(%arg0: i32, %arg1: memref<2x1659xf32, #tpu.memory_space<vmem>>, %arg2: memref<1659x256xbf16, #tpu.memory_space<vmem>>, %arg3: memref<1x256xf32, #tpu.memory_space<vmem>>, %arg4: memref<256x64xbf16, #tpu.memory_space<vmem>>, %arg5: memref<1x64xf32, #tpu.memory_space<vmem>>, %arg6: memref<8x64xf32, #tpu.memory_space<vmem>>, %arg7: memref<1x1xf32, #tpu.memory_space<vmem>>, %arg8: memref<1x2xf32, #tpu.memory_space<vmem>>) attributes {dimension_semantics = [#tpu.dimension_semantics<parallel>], iteration_bounds = array<i64: 1>, scalar_prefetch = 0 : i64, scratch_operands = 0 : i64, tpu.core_type = #tpu.core_type<tc>, window_params = [{transform_indices = @transform_0, window_bounds = array<i64: 2, 1659>}, {pipeline_mode = #tpu.pipeline_mode<synchronous>, transform_indices = @transform_1, window_bounds = array<i64: 1659, 256>}, {pipeline_mode = #tpu.pipeline_mode<synchronous>, transform_indices = @transform_2, window_bounds = array<i64: 1, 256>}, {pipeline_mode = #tpu.pipeline_mode<synchronous>, transform_indices = @transform_3, window_bounds = array<i64: 256, 64>}, {pipeline_mode = #tpu.pipeline_mode<synchronous>, transform_indices = @transform_4, window_bounds = array<i64: 1, 64>}, {pipeline_mode = #tpu.pipeline_mode<synchronous>, transform_indices = @transform_5, window_bounds = array<i64: 8, 64>}, {pipeline_mode = #tpu.pipeline_mode<synchronous>, transform_indices = @transform_6, window_bounds = array<i64: 1, 1>}, {transform_indices = @transform_7, window_bounds = array<i64: 1, 2>}]} {
    %c0 = arith.constant 0 : index
    %c0_0 = arith.constant 0 : index
    %0 = vector.load %arg1[%c0, %c0_0] : memref<2x1659xf32, #tpu.memory_space<vmem>>, vector<2x1659xf32>
    %1 = arith.truncf %0 : vector<2x1659xf32> to vector<2x1659xbf16>
    %c0_1 = arith.constant 0 : index
    %c0_2 = arith.constant 0 : index
    %2 = vector.load %arg2[%c0_1, %c0_2] : memref<1659x256xbf16, #tpu.memory_space<vmem>>, vector<1659x256xbf16>
    %cst = arith.constant dense<0.000000e+00> : vector<2x256xf32>
    %3 = tpu.matmul %1, %2, %cst {dimension_numbers = #tpu.dot_dimension_numbers<[1], [0], [0], [1], [0, 0, 1, 1], [], []>} : vector<2x1659xbf16>, vector<1659x256xbf16>, vector<2x256xf32> -> vector<2x256xf32>
    %c0_3 = arith.constant 0 : index
    %c0_4 = arith.constant 0 : index
    %4 = vector.load %arg3[%c0_3, %c0_4] : memref<1x256xf32, #tpu.memory_space<vmem>>, vector<1x256xf32>
    %5 = vector.broadcast %4 : vector<1x256xf32> to vector<2x256xf32>
    %6 = arith.addf %3, %5 : vector<2x256xf32>
    %7 = math.tanh %6 : vector<2x256xf32>
    %8 = arith.truncf %7 : vector<2x256xf32> to vector<2x256xbf16>
    %c0_5 = arith.constant 0 : index
    %c0_6 = arith.constant 0 : index
    %9 = vector.load %arg4[%c0_5, %c0_6] : memref<256x64xbf16, #tpu.memory_space<vmem>>, vector<256x64xbf16>
    %cst_7 = arith.constant dense<0.000000e+00> : vector<2x64xf32>
    %10 = tpu.matmul %8, %9, %cst_7 {dimension_numbers = #tpu.dot_dimension_numbers<[1], [0], [0], [1], [0, 0, 1, 1], [], []>} : vector<2x256xbf16>, vector<256x64xbf16>, vector<2x64xf32> -> vector<2x64xf32>
    %c0_8 = arith.constant 0 : index
    %c0_9 = arith.constant 0 : index
    %11 = vector.load %arg5[%c0_8, %c0_9] : memref<1x64xf32, #tpu.memory_space<vmem>>, vector<1x64xf32>
    %12 = vector.broadcast %11 : vector<1x64xf32> to vector<2x64xf32>
    %13 = arith.addf %10, %12 : vector<2x64xf32>
    %14 = math.tanh %13 : vector<2x64xf32>
    %c0_10 = arith.constant 0 : index
    %c0_11 = arith.constant 0 : index
    %15 = vector.load %arg6[%c0_10, %c0_11] : memref<8x64xf32, #tpu.memory_space<vmem>>, vector<8x64xf32>
    %cst_12 = arith.constant dense<0.000000e+00> : vector<8x2xf32>
    %16 = tpu.matmul %15, %14, %cst_12 {dimension_numbers = #tpu.dot_dimension_numbers<[1], [1], [0], [0], [0, 0, 1, 0], [], []>} : vector<8x64xf32>, vector<2x64xf32>, vector<8x2xf32> -> vector<8x2xf32>
    %17 = vector.extract_strided_slice %16 {offsets = [0, 0], sizes = [1, 2], strides = [1, 1]} : vector<8x2xf32> to vector<1x2xf32>
    %c0_13 = arith.constant 0 : index
    %c0_14 = arith.constant 0 : index
    %18 = vector.load %arg7[%c0_13, %c0_14] : memref<1x1xf32, #tpu.memory_space<vmem>>, vector<1x1xf32>
    %19 = vector.broadcast %18 : vector<1x1xf32> to vector<1x2xf32>
    %20 = arith.addf %17, %19 : vector<1x2xf32>
    %c0_15 = arith.constant 0 : index
    %c0_16 = arith.constant 0 : index
    %21 = vector.load %arg8[%c0_15, %c0_16] : memref<1x2xf32, #tpu.memory_space<vmem>>, vector<1x2xf32>
    tpu.vector_store %arg8[%c0_15, %c0_16], %20 {strides = array<i32>} : memref<1x2xf32, #tpu.memory_space<vmem>>, vector<1x2xf32>,
    return
  }
  func.func @transform_0(%arg0: i32) -> (i32, i32) {
    %c0_i32 = arith.constant 0 : i32
    %c0_i32_0 = arith.constant 0 : i32
    return %arg0, %c0_i32 : i32, i32
  }
  func.func @transform_1(%arg0: i32) -> (i32, i32) {
    %c0_i32 = arith.constant 0 : i32
    %c0_i32_0 = arith.constant 0 : i32
    %c0_i32_1 = arith.constant 0 : i32
    return %c0_i32, %c0_i32_0 : i32, i32
  }
  func.func @transform_2(%arg0: i32) -> (i32, i32) {
    %c0_i32 = arith.constant 0 : i32
    %c0_i32_0 = arith.constant 0 : i32
    %c0_i32_1 = arith.constant 0 : i32
    return %c0_i32, %c0_i32_0 : i32, i32
  }
  func.func @transform_3(%arg0: i32) -> (i32, i32) {
    %c0_i32 = arith.constant 0 : i32
    %c0_i32_0 = arith.constant 0 : i32
    %c0_i32_1 = arith.constant 0 : i32
    return %c0_i32, %c0_i32_0 : i32, i32
  }
  func.func @transform_4(%arg0: i32) -> (i32, i32) {
    %c0_i32 = arith.constant 0 : i32
    %c0_i32_0 = arith.constant 0 : i32
    %c0_i32_1 = arith.constant 0 : i32
    return %c0_i32, %c0_i32_0 : i32, i32
  }
  func.func @transform_5(%arg0: i32) -> (i32, i32) {
    %c0_i32 = arith.constant 0 : i32
    %c0_i32_0 = arith.constant 0 : i32
    %c0_i32_1 = arith.constant 0 : i32
    return %c0_i32, %c0_i32_0 : i32, i32
  }
  func.func @transform_6(%arg0: i32) -> (i32, i32) {
    %c0_i32 = arith.constant 0 : i32
    %c0_i32_0 = arith.constant 0 : i32
    %c0_i32_1 = arith.constant 0 : i32
    return %c0_i32, %c0_i32_0 : i32, i32
  }
  func.func @transform_7(%arg0: i32) -> (i32, i32) {
    %c0_i32 = arith.constant 0 : i32
    %c0_i32_0 = arith.constant 0 : i32
    return %c0_i32, %arg0 : i32, i32
  }
}

</mosaic_0001>

<bundles_post_ra>
// kernel: tpu_custom_call.1
= control target key start
LH: loop header
LB: loop body
LE: loop exit
PB: predicated region body
PF: predicated region fallthrough
CT: control target
= control target key end

     0   :  { %s2853_s0 = inlined_call_operand.vmem [shape: f32[2,1659], index: 0, kind: input, shape index: {}]   ;;  %s2854_s1 = inlined_call_operand.hbm [shape: bf16[1659,256], index: 1, kind: input, shape index: {}]   ;;  %s2855_s2 = inlined_call_operand.vmem [shape: f32[1,256], index: 2, kind: input, shape index: {}]   ;;  %s2856_s3 = inlined_call_operand.vmem [shape: bf16[256,64], index: 3, kind: input, shape index: {}]   ;;  %s2857_s4 = inlined_call_operand.vmem [shape: f32[1,64], index: 4, kind: input, shape index: {}]   ;;  %s2858_s5 = inlined_call_operand.vmem [shape: f32[8,64], index: 5, kind: input, shape index: {}]   ;;  %s2859_s6 = inlined_call_operand.<no memory space> [shape: f32[1,1], index: 6, kind: input, shape index: {}]   ;;  %s2860_s7 = inlined_call_operand.hbm [shape: f32[1,2], index: 7, kind: output, shape index: {}]  }
   0x1   :  { %v12_v0 = vstv %s2859_s6 }
   0x2   :  { %13 = vst [vmem:[#allocation2] sm:$0x1] %v12_v0 }
   0x3   :  { %14 = vsyncpa [#allocation4], 0 }
   0x4   :  { %15 = vsyncpa [#allocation5], 0  ;;  %s2658_s26 = smov [#allocation3]   ;;  %s2610_s30 = scalar_lea.hbm %s2854_s1, 26624 }
   0x5   :  { %s23_s27 = sshll.u32 %s2658_s26, 4  ;;  %p2611_p0 = scmp.ne.s32.totalorder %s2854_s1, %s2610_s30  ;;  %s24_s27 = int_to_ptr.vmem [resolvable:$true] %s23_s27 }
   0x6   :  { %p2614_p1 = scmp.lt.u32.totalorder %s2610_s30, %s2854_s1 }
   0x8   :  { %p2616_p2 = pnand %p2614_p1, %p2611_p0 }
   0xa   :  { %2619 = shalt.err (!%p2616_p2)
}
   0xb   :  { %s2620_s6 = scalar_lea.vmem %s24_s27, 26624  ;;  %p2625_p4 = scmp.lt.s32.totalorder %s24_s27, %s24_s27 }
   0xc   :  { %p2621_p3 = scmp.ne.s32.totalorder %s24_s27, %s2620_s6  ;;  %p2626_p5 = scmp.lt.s32.totalorder %s2620_s6, %s2620_s6 }
   0xe   :  { %p2627_p6 = por %p2626_p5, %p2625_p4 }
  0x10   :  { %p2628_p7 = pnand %p2627_p6, %p2621_p3 }
  0x12   :  { %2631 = shalt.err (!%p2628_p7)
}
  0x13   :  { %s2659_s12 = smov 128   ;;  %s2660_s13 = smov 8  }
  0x14   :  { %29 = dma.hbm_to_vmem [thread:$0]  %s2854_s1, 26624, %s24_s27, [#allocation4], %s2659_s12, %s2659_s12, %s2660_s13  }
  0x15   :  { %2654 = dma.done.wait [#allocation4], 26624  }
  0x16   :  { %2655 = vsyncadd [#allocation4], 4294940672  ;;  %v2273_v1 = vld [vmem:[#allocation3 + $0x4] ss:$8 sps:$4 sm:$0xff]   ;;  %v2277_v3 = vld [vmem:[#allocation3] ss:$8 sps:$4 sm:$0xff]   ;;  %v56_v39 = vlaneseq }
  0x17   :  { %v2275_v2 = vld [vmem:[#allocation3 + $0x304] ss:$8 sps:$4 sm:$0xff]   ;;  %1408 = vmatprep.subr.bf16.mxu1 %v2273_v1  ;;  %v2278_v4 = vld [vmem:[#allocation3 + $0x300] ss:$8 sps:$4 sm:$0xff]   ;;  %v2279_v5 = vld [vmem:[#allocation3 + $0x14] ss:$8 sps:$4 sm:$0xff]  }
  0x18   :  { %1531 = vmatprep.subr.bf16.mxu0 %v2275_v2  ;;  %1409 = vmatpush1.bf16.msra.mxu1 %v2277_v3  ;;  %v2281_v6 = vld [vmem:[#allocation3 + $0x314] ss:$8 sps:$4 sm:$0xff]   ;;  %v2283_v7 = vld [vmem:[#allocation3 + $0x10] ss:$8 sps:$4 sm:$0xff]   ;;  %v2285_v9 = vld [vmem:[#allocation3 + $0x24] ss:$8 sps:$4 sm:$0xff]  }
  0x19   :  { %1532 = vmatpush1.bf16.msra.mxu0 %v2278_v4  ;;  %1410 = vmatprep.subr.bf16.mxu1 %v2279_v5  ;;  %v2284_v8 = vld [vmem:[#allocation3 + $0x310] ss:$8 sps:$4 sm:$0xff]   ;;  %v2287_v10 = vld [vmem:[#allocation3 + $0x324] ss:$8 sps:$4 sm:$0xff]   ;;  %v2289_v11 = vld [vmem:[#allocation3 + $0x20] ss:$8 sps:$4 sm:$0xff]  }
  0x1a   :  { %1533 = vmatprep.subr.bf16.mxu0 %v2281_v6  ;;  %v2290_v12 = vld [vmem:[#allocation3 + $0x320] ss:$8 sps:$4 sm:$0xff]   ;;  %v2291_v13 = vld [vmem:[#allocation3 + $0x34] ss:$8 sps:$4 sm:$0xff]   ;;  %v2295_v15 = vld [vmem:[#allocation3 + $0x30] ss:$8 sps:$4 sm:$0xff]  }
  0x1b   :  { %v2293_v14 = vld [vmem:[#allocation3 + $0x334] ss:$8 sps:$4 sm:$0xff]   ;;  %v2296_v16 = vld [vmem:[#allocation3 + $0x330] ss:$8 sps:$4 sm:$0xff]   ;;  %v2297_v17 = vld [vmem:[#allocation3 + $0x44] ss:$8 sps:$4 sm:$0xff]  }
  0x1c   :  { %1411 = vmatpush1.bf16.msra.mxu1 %v2283_v7  ;;  %v2299_v18 = vld [vmem:[#allocation3 + $0x344] ss:$8 sps:$4 sm:$0xff]   ;;  %v2301_v19 = vld [vmem:[#allocation3 + $0x40] ss:$8 sps:$4 sm:$0xff]   ;;  %v2303_v21 = vld [vmem:[#allocation3 + $0x54] ss:$8 sps:$4 sm:$0xff]  }
  0x1d   :  { %1534 = vmatpush1.bf16.msra.mxu0 %v2284_v8  ;;  %1412 = vmatprep.subr.bf16.mxu1 %v2285_v9  ;;  %v2302_v20 = vld [vmem:[#allocation3 + $0x340] ss:$8 sps:$4 sm:$0xff]   ;;  %v2305_v22 = vld [vmem:[#allocation3 + $0x354] ss:$8 sps:$4 sm:$0xff]   ;;  %v2307_v23 = vld [vmem:[#allocation3 + $0x50] ss:$8 sps:$4 sm:$0xff]  }
  0x1e   :  { %1535 = vmatprep.subr.bf16.mxu0 %v2287_v10  ;;  %v2308_v24 = vld [vmem:[#allocation3 + $0x350] ss:$8 sps:$4 sm:$0xff]   ;;  %v2309_v25 = vld [vmem:[#allocation3 + $0x64] ss:$8 sps:$4 sm:$0xff]   ;;  %v2313_v27 = vld [vmem:[#allocation3 + $0x60] ss:$8 sps:$4 sm:$0xff]  }
  0x1f   :  { %v2311_v26 = vld [vmem:[#allocation3 + $0x364] ss:$8 sps:$4 sm:$0xff]   ;;  %v2314_v28 = vld [vmem:[#allocation3 + $0x360] ss:$8 sps:$4 sm:$0xff]   ;;  %v2315_v29 = vld [vmem:[#allocation3 + $0x74] ss:$8 sps:$4 sm:$0xff]  }
  0x20   :  { %1413 = vmatpush1.bf16.msra.mxu1 %v2289_v11  ;;  %v2317_v30 = vld [vmem:[#allocation3 + $0x374] ss:$8 sps:$4 sm:$0xff]   ;;  %v2319_v31 = vld [vmem:[#allocation3 + $0x70] ss:$8 sps:$4 sm:$0xff]   ;;  %v2321_v33 = vld [vmem:[#allocation3 + $0x84] ss:$8 sps:$4 sm:$0xff]  }
  0x21   :  { %1536 = vmatpush1.bf16.msra.mxu0 %v2290_v12  ;;  %1414 = vmatprep.subr.bf16.mxu1 %v2291_v13  ;;  %v2320_v32 = vld [vmem:[#allocation3 + $0x370] ss:$8 sps:$4 sm:$0xff]   ;;  %v2323_v34 = vld [vmem:[#allocation3 + $0x384] ss:$8 sps:$4 sm:$0xff]   ;;  %v2325_v35 = vld [vmem:[#allocation3 + $0x80] ss:$8 sps:$4 sm:$0xff]  }
  0x22   :  { %1537 = vmatprep.subr.bf16.mxu0 %v2293_v14  ;;  %v2326_v36 = vld [vmem:[#allocation3 + $0x380] ss:$8 sps:$4 sm:$0xff]   ;;  %v2661_v37 = vmov 1983009808   ;;  %v2327_v40 = vld [vmem:[#allocation3 + $0x94] ss:$8 sps:$4 sm:$0xff]  }
  0x23   :  { %v54_v38 = vunpack.c.l.s4 %v2661_v37  ;;  %v2329_v41 = vld [vmem:[#allocation3 + $0x394] ss:$8 sps:$4 sm:$0xff]   ;;  %v2331_v42 = vld [vmem:[#allocation3 + $0x90] ss:$8 sps:$4 sm:$0xff]   ;;  %v2722_v44 = vshrl.u32 %v56_v39, 7  ;;  %v45_v57 = vld [vmem:[%s2853_s0 + $0x8] sm:$0xff] }
  0x24   :  { %1415 = vmatpush1.bf16.msra.mxu1 %v2295_v15  ;;  %v2332_v45 = vld [vmem:[#allocation3 + $0x390] ss:$8 sps:$4 sm:$0xff]   ;;  %v2333_v46 = vld [vmem:[#allocation3 + $0xa4] ss:$8 sps:$4 sm:$0xff]   ;;  %v2337_v48 = vld [vmem:[#allocation3 + $0xa0] ss:$8 sps:$4 sm:$0xff]   ;;  %v69_v61 = vcombine.high %v45_v57, %v45_v57 }
  0x25   :  { %1538 = vmatpush1.bf16.msra.mxu0 %v2296_v16  ;;  %1416 = vmatprep.subr.bf16.mxu1 %v2297_v17  ;;  %v55_v43 = vunpack.c.0.s8 %v54_v38  ;;  %v2335_v47 = vld [vmem:[#allocation3 + $0x3a4] ss:$8 sps:$4 sm:$0xff]   ;;  %v2338_v49 = vld [vmem:[#allocation3 + $0x3a0] ss:$8 sps:$4 sm:$0xff]   ;;  %v2339_v51 = vld [vmem:[#allocation3 + $0xb4] ss:$8 sps:$4 sm:$0xff]  }
  0x26   :  { %1539 = vmatprep.subr.bf16.mxu0 %v2299_v18  ;;  %v2341_v52 = vld [vmem:[#allocation3 + $0x3b4] ss:$8 sps:$4 sm:$0xff]   ;;  %v2343_v54 = vld [vmem:[#allocation3 + $0xb0] ss:$8 sps:$4 sm:$0xff]   ;;  %v2345_v58 = vld [vmem:[#allocation3 + $0xc4] ss:$8 sps:$4 sm:$0xff]  }
  0x27   :  { %v2725_v50 = vsub.s32 %v55_v43, %v2722_v44  ;;  %v44_v53 = vld [vmem:[%s2853_s0] sm:$0xff]  ;;  %v2344_v56 = vld [vmem:[#allocation3 + $0x3b0] ss:$8 sps:$4 sm:$0xff]   ;;  %vm1398_vm0 = vcmask 1044480   ;;  %vm1399_vm1 = vcmask 1045504   ;;  %vm1394_vm2 = vcmask 1006592  }
  0x28   :  { %1417 = vmatpush1.bf16.msra.mxu1 %v2301_v19  ;;  %v2347_v59 = vld [vmem:[#allocation3 + $0x3c4] ss:$8 sps:$4 sm:$0xff]   ;;  %v2349_v0 = vld [vmem:[#allocation3 + $0xc0] ss:$8 sps:$4 sm:$0xff]   ;;  %v2351_v2 = vld [vmem:[#allocation3 + $0xd4] ss:$8 sps:$4 sm:$0xff]   ;;  %v52_v10 = vcombine.high %v44_v53, %v44_v53 }
  0x29   :  { %1540 = vmatpush1.bf16.msra.mxu0 %v2302_v20  ;;  %1418 = vmatprep.subr.bf16.mxu1 %v2303_v21  ;;  %v2731_v55 = vrot.slane %v44_v53, %v2725_v50  ;;  %v83_v63 = vrot.slane %v69_v61, %v2725_v50  ;;  %v2350_v1 = vld [vmem:[#allocation3 + $0x3c0] ss:$8 sps:$4 sm:$0xff]   ;;  %v2353_v3 = vld [vmem:[#allocation3 + $0x3d4] ss:$8 sps:$4 sm:$0xff]   ;;  %v2355_v6 = vld [vmem:[#allocation3 + $0xd0] ss:$8 sps:$4 sm:$0xff]   ;;  %v2743_v18 = vrot.slane %v45_v57, %v2725_v50 }
  0x2a   :  { %1541 = vmatprep.subr.bf16.mxu0 %v2305_v22  ;;  %v2356_v7 = vld [vmem:[#allocation3 + $0x3d0] ss:$8 sps:$4 sm:$0xff]   ;;  %v2357_v8 = vld [vmem:[#allocation3 + $0xe4] ss:$8 sps:$4 sm:$0xff]   ;;  %v2361_v11 = vld [vmem:[#allocation3 + $0xe0] ss:$8 sps:$4 sm:$0xff]   ;;  %v2740_v15 = vrot.slane %v52_v10, %v2725_v50 }
  0x2b   :  { %v67_v60 = vcombine.high %v2731_v55, %v2731_v55  ;;  %v85_v4 = vcombine.high %v83_v63, %v83_v63  ;;  %v2359_v9 = vld [vmem:[#allocation3 + $0x3e4] ss:$8 sps:$4 sm:$0xff]   ;;  %v2362_v12 = vld [vmem:[#allocation3 + $0x3e0] ss:$8 sps:$4 sm:$0xff]   ;;  %v2363_v13 = vld [vmem:[#allocation3 + $0xf4] ss:$8 sps:$4 sm:$0xff]   ;;  %v123_v22 = vpack.c.bf16 %v2731_v55, %v2731_v55 }
  0x2c   :  { %1419 = vmatpush1.bf16.msra.mxu1 %v2307_v23  ;;  %v2365_v14 = vld [vmem:[#allocation3 + $0x3f4] ss:$8 sps:$4 sm:$0xff]   ;;  %v2367_v16 = vld [vmem:[#allocation3 + $0xf0] ss:$8 sps:$4 sm:$0xff]   ;;  %v2372_v19 = vld [vmem:[#allocation3 + $0x104] ss:$8 sps:$4 sm:$0xff]   ;;  %v68_v21 = vcombine.high %v2740_v15, %v2740_v15  ;;  %v129_v23 = vpack.c.bf16 %v83_v63, %v83_v63 }
  0x2d   :  { %1542 = vmatpush1.bf16.msra.mxu0 %v2308_v24  ;;  %1420 = vmatprep.subr.bf16.mxu1 %v2309_v25  ;;  %v124_v62 = vpack.c.bf16 %v67_v60, %v67_v60  ;;  %v130_v5 = vpack.c.bf16 %v85_v4, %v85_v4  ;;  %v2368_v17 = vld [vmem:[#allocation3 + $0x3f0] ss:$8 sps:$4 sm:$0xff]   ;;  %v2376_v20 = vld [vmem:[#allocation3 + $0x404] ss:$8 sps:$4 sm:$0xff]   ;;  %v2370_v24 = vld [vmem:[#allocation3 + $0x100] ss:$8 sps:$4 sm:$0xff]  }
  0x2e   :  { %1543 = vmatprep.subr.bf16.mxu0 %v2311_v26  ;;  %v2374_v25 = vld [vmem:[#allocation3 + $0x400] ss:$8 sps:$4 sm:$0xff]   ;;  %v2379_v26 = vld [vmem:[#allocation3 + $0x114] ss:$8 sps:$4 sm:$0xff]   ;;  %v2389_v37 = vld [vmem:[#allocation3 + $0x130] ss:$8 sps:$4 sm:$0xff]  }
  0x2f   :  { %1440 = vmatprep.mubr.bf16.mxu1 %v124_v62  ;;  %1563 = vmatprep.mubr.bf16.mxu0 %v130_v5  ;;  %v2392_v38 = vld [vmem:[#allocation3 + $0x430] ss:$8 sps:$4 sm:$0xff]   ;;  %v2397_v39 = vld [vmem:[#allocation3 + $0x144] ss:$8 sps:$4 sm:$0xff]   ;;  %v2403_v43 = vld [vmem:[#allocation3 + $0x154] ss:$8 sps:$4 sm:$0xff]  }
  0x30   :  { %1421 = vmatpush1.bf16.msra.mxu1 %v2313_v27  ;;  %v2382_v27 = vld [vmem:[#allocation3 + $0x414] ss:$8 sps:$4 sm:$0xff]   ;;  %v2410_v53 = vld [vmem:[#allocation3 + $0x460] ss:$8 sps:$4 sm:$0xff]   ;;  %v2421_v60 = vld [vmem:[#allocation3 + $0x184] ss:$8 sps:$4 sm:$0xff]  }
  0x31   :  { %1544 = vmatpush1.bf16.msra.mxu0 %v2314_v28  ;;  %1422 = vmatprep.subr.bf16.mxu1 %v2315_v29  ;;  %v126_v28 = vpack.c.bf16 %v68_v21, %v68_v21  ;;  %v2377_v29 = vld [vmem:[#allocation3 + $0x110] ss:$8 sps:$4 sm:$0xff]   ;;  %v2424_v62 = vld [vmem:[#allocation3 + $0x484] ss:$8 sps:$4 sm:$0xff]   ;;  %v2419_v63 = vld [vmem:[#allocation3 + $0x180] ss:$8 sps:$4 sm:$0xff]  }
  0x32   :  { %1545 = vmatprep.subr.bf16.mxu0 %v2317_v30  ;;  %v2380_v30 = vld [vmem:[#allocation3 + $0x410] ss:$8 sps:$4 sm:$0xff]   ;;  %v2439_v10 = vld [vmem:[#allocation3 + $0x1b4] ss:$8 sps:$4 sm:$0xff]   ;;  %vm2665_vm3 = vmmov 0   ;;  %vm1876_vm4 = vcmask 523264  }
  0x33   :  { %v2425_v4 = vld [vmem:[#allocation3 + $0x190] ss:$8 sps:$4 sm:$0xff]   ;;  %v2454_v21 = vld [vmem:[#allocation3 + $0x4d4] ss:$8 sps:$4 sm:$0xff]   ;;  %s2666_s9 = smov [#allocation6]   ;;  %vm1964_vm5 = vcmask 8192  }
  0x34   :  { %1423 = vmatpush1.bf16.msra.mxu1 %v2319_v31  ;;  %v2385_v31 = vld [vmem:[#allocation3 + $0x124] ss:$8 sps:$4 sm:$0xff]   ;;  %v2428_v5 = vld [vmem:[#allocation3 + $0x490] ss:$8 sps:$4 sm:$0xff]   ;;  %s1972_s10 = sshll.u32 %s2666_s9, 4  ;;  %s1973_s10 = int_to_ptr.vmem [resolvable:$true] %s1972_s10 }
  0x35   :  { %1546 = vmatpush1.bf16.msra.mxu0 %v2320_v32  ;;  %1424 = vmatprep.subr.bf16.mxu1 %v2321_v33  ;;  %v2388_v32 = vld [vmem:[#allocation3 + $0x424] ss:$8 sps:$4 sm:$0xff]   ;;  %v2383_v33 = vld [vmem:[#allocation3 + $0x120] ss:$8 sps:$4 sm:$0xff]   ;;  %s2636_s11 = scalar_lea.vmem %s1973_s10, 32  ;;  %p2637_p9 = scmp.lt.s32.totalorder %s1973_s10, %s1973_s10 }
  0x36   :  { %1547 = vmatprep.subr.bf16.mxu0 %v2323_v34  ;;  %v2386_v34 = vld [vmem:[#allocation3 + $0x420] ss:$8 sps:$4 sm:$0xff]  }
  0x38   :  { %1425 = vmatpush1.bf16.msra.mxu1 %v2325_v35  ;;  %v2391_v35 = vld [vmem:[#allocation3 + $0x134] ss:$8 sps:$4 sm:$0xff]  }
  0x39   :  { %1548 = vmatpush1.bf16.msra.mxu0 %v2326_v36  ;;  %1426 = vmatprep.subr.bf16.mxu1 %v2327_v40  ;;  %v2394_v36 = vld [vmem:[#allocation3 + $0x434] ss:$8 sps:$4 sm:$0xff]   ;;  %v2400_v40 = vld [vmem:[#allocation3 + $0x444] ss:$8 sps:$4 sm:$0xff]  }
  0x3a   :  { %1549 = vmatprep.subr.bf16.mxu0 %v2329_v41  ;;  %v2395_v41 = vld [vmem:[#allocation3 + $0x140] ss:$8 sps:$4 sm:$0xff]  }
  0x3c   :  { %1427 = vmatpush1.bf16.msra.mxu1 %v2331_v42  ;;  %v2398_v42 = vld [vmem:[#allocation3 + $0x440] ss:$8 sps:$4 sm:$0xff]  }
  0x3d   :  { %1550 = vmatpush1.bf16.msra.mxu0 %v2332_v45  ;;  %1428 = vmatprep.subr.bf16.mxu1 %v2333_v46  ;;  %v2406_v45 = vld [vmem:[#allocation3 + $0x454] ss:$8 sps:$4 sm:$0xff]   ;;  %v2401_v46 = vld [vmem:[#allocation3 + $0x150] ss:$8 sps:$4 sm:$0xff]  }
  0x3e   :  { %1551 = vmatprep.subr.bf16.mxu0 %v2335_v47  ;;  %v2404_v47 = vld [vmem:[#allocation3 + $0x450] ss:$8 sps:$4 sm:$0xff]  }
  0x40   :  { %1429 = vmatpush1.bf16.msra.mxu1 %v2337_v48  ;;  %v2409_v48 = vld [vmem:[#allocation3 + $0x164] ss:$8 sps:$4 sm:$0xff]  }
  0x41   :  { %1552 = vmatpush1.bf16.msra.mxu0 %v2338_v49  ;;  %1430 = vmatprep.subr.bf16.mxu1 %v2339_v51  ;;  %v2412_v49 = vld [vmem:[#allocation3 + $0x464] ss:$8 sps:$4 sm:$0xff]   ;;  %v2407_v51 = vld [vmem:[#allocation3 + $0x160] ss:$8 sps:$4 sm:$0xff]  }
  0x42   :  { %1553 = vmatprep.subr.bf16.mxu0 %v2341_v52  ;;  %v2752_v52 = vld [vmem:[%s2853_s0 + $0x10] sm:$0xff] }
  0x43   :  { %v2756_v55 = vrot.slane %v2752_v52, %v2725_v50 }
  0x44   :  { %1431 = vmatpush1.bf16.msra.mxu1 %v2343_v54  ;;  %v2415_v54 = vld [vmem:[#allocation3 + $0x174] ss:$8 sps:$4 sm:$0xff]  }
  0x45   :  { %1554 = vmatpush1.bf16.msra.mxu0 %v2344_v56  ;;  %1432 = vmatprep.subr.bf16.mxu1 %v2345_v58  ;;  %v2418_v56 = vld [vmem:[#allocation3 + $0x474] ss:$8 sps:$4 sm:$0xff]   ;;  %v101_v57 = vcombine.high %v2756_v55, %v2756_v55  ;;  %v2413_v58 = vld [vmem:[#allocation3 + $0x170] ss:$8 sps:$4 sm:$0xff]  }
  0x46   :  { %1555 = vmatprep.subr.bf16.mxu0 %v2347_v59  ;;  %v2416_v59 = vld [vmem:[#allocation3 + $0x470] ss:$8 sps:$4 sm:$0xff]  }
  0x47   :  { %v132_v61 = vpack.c.bf16 %v101_v57, %v101_v57  ;;  %v2496_v57 = vld [vmem:[#allocation3 + $0x544] ss:$8 sps:$4 sm:$0xff]  }
  0x48   :  { %1433 = vmatpush1.bf16.msra.mxu1 %v2349_v0  ;;  %v2422_v0 = vld [vmem:[#allocation3 + $0x480] ss:$8 sps:$4 sm:$0xff]  }
  0x49   :  { %1556 = vmatpush1.bf16.msra.mxu0 %v2350_v1  ;;  %1434 = vmatprep.subr.bf16.mxu1 %v2351_v2  ;;  %v2427_v1 = vld [vmem:[#allocation3 + $0x194] ss:$8 sps:$4 sm:$0xff]  }
  0x4a   :  { %1557 = vmatprep.subr.bf16.mxu0 %v2353_v3  ;;  %v2430_v2 = vld [vmem:[#allocation3 + $0x494] ss:$8 sps:$4 sm:$0xff]   ;;  %v2662_v3 = vmov 0  }
  0x4b   :  { %2272 = vset.pattern.permute.xlu0 %v2662_v3 }
  0x4c   :  { %1435 = vmatpush1.bf16.msra.mxu1 %v2355_v6  ;;  %v2433_v6 = vld [vmem:[#allocation3 + $0x1a4] ss:$8 sps:$4 sm:$0xff]  }
  0x4d   :  { %1558 = vmatpush1.bf16.msra.mxu0 %v2356_v7  ;;  %1436 = vmatprep.subr.bf16.mxu1 %v2357_v8  ;;  %v2436_v7 = vld [vmem:[#allocation3 + $0x4a4] ss:$8 sps:$4 sm:$0xff]   ;;  %v2431_v8 = vld [vmem:[#allocation3 + $0x1a0] ss:$8 sps:$4 sm:$0xff]  }
  0x4e   :  { %1559 = vmatprep.subr.bf16.mxu0 %v2359_v9  ;;  %v2434_v9 = vld [vmem:[#allocation3 + $0x4a0] ss:$8 sps:$4 sm:$0xff]  }
  0x50   :  { %1437 = vmatpush1.bf16.msra.mxu1 %v2361_v11  ;;  %v2442_v11 = vld [vmem:[#allocation3 + $0x4b4] ss:$8 sps:$4 sm:$0xff]  }
  0x51   :  { %1560 = vmatpush1.bf16.msra.mxu0 %v2362_v12  ;;  %1438 = vmatprep.subr.bf16.mxu1 %v2363_v13  ;;  %v2437_v12 = vld [vmem:[#allocation3 + $0x1b0] ss:$8 sps:$4 sm:$0xff]  }
  0x52   :  { %1561 = vmatprep.subr.bf16.mxu0 %v2365_v14  ;;  %v2440_v13 = vld [vmem:[#allocation3 + $0x4b0] ss:$8 sps:$4 sm:$0xff]   ;;  %v2445_v14 = vld [vmem:[#allocation3 + $0x1c4] ss:$8 sps:$4 sm:$0xff]  }
  0x54   :  { %1439 = vmatpush1.bf16.msra.mxu1 %v2367_v16  ;;  %v2448_v16 = vld [vmem:[#allocation3 + $0x4c4] ss:$8 sps:$4 sm:$0xff]  }
  0x55   :  { %1562 = vmatpush1.bf16.msra.mxu0 %v2368_v17  ;;  %1449 = vmatprep.subr.bf16.mxu1 %v2372_v19  ;;  %v2443_v17 = vld [vmem:[#allocation3 + $0x1c0] ss:$8 sps:$4 sm:$0xff]  }
  0x56   :  { %1572 = vmatprep.subr.bf16.mxu0 %v2376_v20  ;;  %v2446_v19 = vld [vmem:[#allocation3 + $0x4c0] ss:$8 sps:$4 sm:$0xff]   ;;  %v2451_v20 = vld [vmem:[#allocation3 + $0x1d4] ss:$8 sps:$4 sm:$0xff]  }
  0x57   :  { %1441 = vmatmul.mubr.bf16.vlgmr.msra.gmra.mrb[0].mxu1 %v123_v22  ;;  %v2449_v22 = vld [vmem:[#allocation3 + $0x1d0] ss:$8 sps:$4 sm:$0xff]  }
  0x58   :  { %1564 = vmatmul.mubr.bf16.vlgmr.msra.gmra.mrb[0].mxu0 %v129_v23  ;;  %1450 = vmatpush1.bf16.msra.mxu1 %v2370_v24  ;;  %v2452_v23 = vld [vmem:[#allocation3 + $0x4d0] ss:$8 sps:$4 sm:$0xff]   ;;  %v2457_v24 = vld [vmem:[#allocation3 + $0x1e4] ss:$8 sps:$4 sm:$0xff]  }
  0x59   :  { %1573 = vmatpush1.bf16.msra.mxu0 %v2374_v25  ;;  %1451 = vmatprep.subr.bf16.mxu1 %v2379_v26  ;;  %v2460_v25 = vld [vmem:[#allocation3 + $0x4e4] ss:$8 sps:$4 sm:$0xff]   ;;  %v86_v26 = vcombine.high %v2752_v52, %v2752_v52  ;;  %v2487_v52 = vld [vmem:[#allocation3 + $0x234] ss:$8 sps:$4 sm:$0xff]  }
  0x5a   :  { %1574 = vmatprep.subr.bf16.mxu0 %v2382_v27  ;;  %1481 = vmatprep.mubr.bf16.mxu1 %v126_v28  ;;  %v2455_v27 = vld [vmem:[#allocation3 + $0x1e0] ss:$8 sps:$4 sm:$0xff]  }
  0x5b   :  { %1604 = vmatprep.mubr.bf16.mxu0 %v132_v61  ;;  %v2458_v28 = vld [vmem:[#allocation3 + $0x4e0] ss:$8 sps:$4 sm:$0xff]   ;;  %v2502_v61 = vld [vmem:[#allocation3 + $0x554] ss:$8 sps:$4 sm:$0xff]  }
  0x5c   :  { %1452 = vmatpush1.bf16.msra.mxu1 %v2377_v29  ;;  %v2463_v29 = vld [vmem:[#allocation3 + $0x1f4] ss:$8 sps:$4 sm:$0xff]  }
  0x5d   :  { %1575 = vmatpush1.bf16.msra.mxu0 %v2380_v30  ;;  %1453 = vmatprep.subr.bf16.mxu1 %v2385_v31  ;;  %v2466_v30 = vld [vmem:[#allocation3 + $0x4f4] ss:$8 sps:$4 sm:$0xff]   ;;  %v2764_v31 = vrot.slane %v86_v26, %v2725_v50  ;;  %v131_v50 = vpack.c.bf16 %v2756_v55, %v2756_v55  ;;  %v2488_v55 = vld [vmem:[#allocation3 + $0x530] ss:$8 sps:$4 sm:$0xff]  }
  0x5e   :  { %1576 = vmatprep.subr.bf16.mxu0 %v2388_v32  ;;  %v2461_v32 = vld [vmem:[#allocation3 + $0x1f0] ss:$8 sps:$4 sm:$0xff]  }
  0x5f   :  { %v2536_v26 = vld [vmem:[#allocation3 + $0x5b0] ss:$8 sps:$4 sm:$0xff]  }
  0x60   :  { %1454 = vmatpush1.bf16.msra.mxu1 %v2383_v33  ;;  %v2464_v33 = vld [vmem:[#allocation3 + $0x4f0] ss:$8 sps:$4 sm:$0xff]  }
  0x61   :  { %1577 = vmatpush1.bf16.msra.mxu0 %v2386_v34  ;;  %1455 = vmatprep.subr.bf16.mxu1 %v2391_v35  ;;  %v2469_v34 = vld [vmem:[#allocation3 + $0x204] ss:$8 sps:$4 sm:$0xff]  }
  0x62   :  { %1578 = vmatprep.subr.bf16.mxu0 %v2394_v36  ;;  %v2472_v35 = vld [vmem:[#allocation3 + $0x504] ss:$8 sps:$4 sm:$0xff]   ;;  %v84_v36 = vcombine.high %v2743_v18, %v2743_v18 }
  0x64   :  { %1456 = vmatpush1.bf16.msra.mxu1 %v2389_v37  ;;  %v102_v37 = vcombine.high %v2764_v31, %v2764_v31 }
  0x65   :  { %1579 = vmatpush1.bf16.msra.mxu0 %v2392_v38  ;;  %1457 = vmatprep.subr.bf16.mxu1 %v2397_v39  ;;  %v2467_v38 = vld [vmem:[#allocation3 + $0x200] ss:$8 sps:$4 sm:$0xff]   ;;  %v125_v39 = vpack.c.bf16 %v2740_v15, %v2740_v15  ;;  %v2484_v15 = vld [vmem:[#allocation3 + $0x524] ss:$8 sps:$4 sm:$0xff]  }
  0x66   :  { %1580 = vmatprep.subr.bf16.mxu0 %v2400_v40  ;;  %v2470_v40 = vld [vmem:[#allocation3 + $0x500] ss:$8 sps:$4 sm:$0xff]  }
  0x68   :  { %1458 = vmatpush1.bf16.msra.mxu1 %v2395_v41  ;;  %v2475_v41 = vld [vmem:[#allocation3 + $0x214] ss:$8 sps:$4 sm:$0xff]  }
  0x69   :  { %1581 = vmatpush1.bf16.msra.mxu0 %v2398_v42  ;;  %1459 = vmatprep.subr.bf16.mxu1 %v2403_v43  ;;  %v2478_v42 = vld [vmem:[#allocation3 + $0x514] ss:$8 sps:$4 sm:$0xff]   ;;  %v128_v43 = vpack.c.bf16 %v84_v36, %v84_v36  ;;  %v2553_v36 = vld [vmem:[#allocation3 + $0x2e4] ss:$8 sps:$4 sm:$0xff]  }
  0x6a   :  { %1582 = vmatprep.subr.bf16.mxu0 %v2406_v45  ;;  %v134_v45 = vpack.c.bf16 %v102_v37, %v102_v37  ;;  %v2556_v37 = vld [vmem:[#allocation3 + $0x5e4] ss:$8 sps:$4 sm:$0xff]  }
  0x6c   :  { %1460 = vmatpush1.bf16.msra.mxu1 %v2401_v46  ;;  %v2473_v46 = vld [vmem:[#allocation3 + $0x210] ss:$8 sps:$4 sm:$0xff]  }
  0x6d   :  { %1583 = vmatpush1.bf16.msra.mxu0 %v2404_v47  ;;  %1461 = vmatprep.subr.bf16.mxu1 %v2409_v48  ;;  %v2476_v47 = vld [vmem:[#allocation3 + $0x510] ss:$8 sps:$4 sm:$0xff]   ;;  %v2481_v48 = vld [vmem:[#allocation3 + $0x224] ss:$8 sps:$4 sm:$0xff]  }
  0x6e   :  { %1584 = vmatprep.subr.bf16.mxu0 %v2412_v49  ;;  %v2479_v49 = vld [vmem:[#allocation3 + $0x220] ss:$8 sps:$4 sm:$0xff]  }
  0x70   :  { %1462 = vmatpush1.bf16.msra.mxu1 %v2407_v51  ;;  %v2482_v51 = vld [vmem:[#allocation3 + $0x520] ss:$8 sps:$4 sm:$0xff]  }
  0x71   :  { %1585 = vmatpush1.bf16.msra.mxu0 %v2410_v53  ;;  %1463 = vmatprep.subr.bf16.mxu1 %v2415_v54  ;;  %v2490_v53 = vld [vmem:[#allocation3 + $0x534] ss:$8 sps:$4 sm:$0xff]   ;;  %v2485_v54 = vld [vmem:[#allocation3 + $0x230] ss:$8 sps:$4 sm:$0xff]  }
  0x72   :  { %1586 = vmatprep.subr.bf16.mxu0 %v2418_v56  ;;  %v2493_v56 = vld [vmem:[#allocation3 + $0x244] ss:$8 sps:$4 sm:$0xff]  }
  0x74   :  { %1464 = vmatpush1.bf16.msra.mxu1 %v2413_v58  ;;  %v2491_v58 = vld [vmem:[#allocation3 + $0x240] ss:$8 sps:$4 sm:$0xff]  }
  0x75   :  { %1587 = vmatpush1.bf16.msra.mxu0 %v2416_v59  ;;  %1465 = vmatprep.subr.bf16.mxu1 %v2421_v60  ;;  %v2494_v59 = vld [vmem:[#allocation3 + $0x540] ss:$8 sps:$4 sm:$0xff]   ;;  %v2499_v60 = vld [vmem:[#allocation3 + $0x254] ss:$8 sps:$4 sm:$0xff]  }
  0x76   :  { %1588 = vmatprep.subr.bf16.mxu0 %v2424_v62  ;;  %v2497_v62 = vld [vmem:[#allocation3 + $0x250] ss:$8 sps:$4 sm:$0xff]  }
  0x78   :  { %1466 = vmatpush1.bf16.msra.mxu1 %v2419_v63  ;;  %v2500_v63 = vld [vmem:[#allocation3 + $0x550] ss:$8 sps:$4 sm:$0xff]  }
  0x79   :  { %1589 = vmatpush1.bf16.msra.mxu0 %v2422_v0  ;;  %1467 = vmatprep.subr.bf16.mxu1 %v2427_v1  ;;  %v2505_v0 = vld [vmem:[#allocation3 + $0x264] ss:$8 sps:$4 sm:$0xff]  }
  0x7a   :  { %1590 = vmatprep.subr.bf16.mxu0 %v2430_v2  ;;  %v2508_v1 = vld [vmem:[#allocation3 + $0x564] ss:$8 sps:$4 sm:$0xff]   ;;  %v2503_v2 = vld [vmem:[#allocation3 + $0x260] ss:$8 sps:$4 sm:$0xff]  }
  0x7c   :  { %1468 = vmatpush1.bf16.msra.mxu1 %v2425_v4  ;;  %v2506_v4 = vld [vmem:[#allocation3 + $0x560] ss:$8 sps:$4 sm:$0xff]  }
  0x7d   :  { %1591 = vmatpush1.bf16.msra.mxu0 %v2428_v5  ;;  %1469 = vmatprep.subr.bf16.mxu1 %v2433_v6  ;;  %v2511_v5 = vld [vmem:[#allocation3 + $0x274] ss:$8 sps:$4 sm:$0xff]  }
  0x7e   :  { %1592 = vmatprep.subr.bf16.mxu0 %v2436_v7  ;;  %v2514_v6 = vld [vmem:[#allocation3 + $0x574] ss:$8 sps:$4 sm:$0xff]   ;;  %v2509_v7 = vld [vmem:[#allocation3 + $0x270] ss:$8 sps:$4 sm:$0xff]  }
  0x80   :  { %1470 = vmatpush1.bf16.msra.mxu1 %v2431_v8  ;;  %v2512_v8 = vld [vmem:[#allocation3 + $0x570] ss:$8 sps:$4 sm:$0xff]  }
  0x81   :  { %1593 = vmatpush1.bf16.msra.mxu0 %v2434_v9  ;;  %1471 = vmatprep.subr.bf16.mxu1 %v2439_v10  ;;  %v2517_v9 = vld [vmem:[#allocation3 + $0x284] ss:$8 sps:$4 sm:$0xff]  }
  0x82   :  { %1594 = vmatprep.subr.bf16.mxu0 %v2442_v11  ;;  %v2520_v10 = vld [vmem:[#allocation3 + $0x584] ss:$8 sps:$4 sm:$0xff]   ;;  %v2515_v11 = vld [vmem:[#allocation3 + $0x280] ss:$8 sps:$4 sm:$0xff]  }
  0x84   :  { %1472 = vmatpush1.bf16.msra.mxu1 %v2437_v12  ;;  %v2518_v12 = vld [vmem:[#allocation3 + $0x580] ss:$8 sps:$4 sm:$0xff]  }
  0x85   :  { %1595 = vmatpush1.bf16.msra.mxu0 %v2440_v13  ;;  %1473 = vmatprep.subr.bf16.mxu1 %v2445_v14  ;;  %v2523_v13 = vld [vmem:[#allocation3 + $0x294] ss:$8 sps:$4 sm:$0xff]  }
  0x86   :  { %1596 = vmatprep.subr.bf16.mxu0 %v2448_v16  ;;  %v2526_v14 = vld [vmem:[#allocation3 + $0x594] ss:$8 sps:$4 sm:$0xff]   ;;  %v2521_v16 = vld [vmem:[#allocation3 + $0x290] ss:$8 sps:$4 sm:$0xff]  }
  0x88   :  { %1474 = vmatpush1.bf16.msra.mxu1 %v2443_v17  ;;  %v2524_v17 = vld [vmem:[#allocation3 + $0x590] ss:$8 sps:$4 sm:$0xff]  }
  0x89   :  { %1597 = vmatpush1.bf16.msra.mxu0 %v2446_v19  ;;  %1475 = vmatprep.subr.bf16.mxu1 %v2451_v20  ;;  %v2529_v19 = vld [vmem:[#allocation3 + $0x2a4] ss:$8 sps:$4 sm:$0xff]  }
  0x8a   :  { %1598 = vmatprep.subr.bf16.mxu0 %v2454_v21  ;;  %v2532_v20 = vld [vmem:[#allocation3 + $0x5a4] ss:$8 sps:$4 sm:$0xff]   ;;  %v2527_v21 = vld [vmem:[#allocation3 + $0x2a0] ss:$8 sps:$4 sm:$0xff]  }
  0x8c   :  { %1476 = vmatpush1.bf16.msra.mxu1 %v2449_v22  ;;  %v2530_v22 = vld [vmem:[#allocation3 + $0x5a0] ss:$8 sps:$4 sm:$0xff]  }
  0x8d   :  { %1599 = vmatpush1.bf16.msra.mxu0 %v2452_v23  ;;  %1477 = vmatprep.subr.bf16.mxu1 %v2457_v24  ;;  %v2535_v23 = vld [vmem:[#allocation3 + $0x2b4] ss:$8 sps:$4 sm:$0xff]  }
  0x8e   :  { %1600 = vmatprep.subr.bf16.mxu0 %v2460_v25  ;;  %v2538_v24 = vld [vmem:[#allocation3 + $0x5b4] ss:$8 sps:$4 sm:$0xff]   ;;  %v2533_v25 = vld [vmem:[#allocation3 + $0x2b0] ss:$8 sps:$4 sm:$0xff]  }
  0x90   :  { %1478 = vmatpush1.bf16.msra.mxu1 %v2455_v27  ;;  %v2541_v27 = vld [vmem:[#allocation3 + $0x2c4] ss:$8 sps:$4 sm:$0xff]  }
  0x91   :  { %1601 = vmatpush1.bf16.msra.mxu0 %v2458_v28  ;;  %1479 = vmatprep.subr.bf16.mxu1 %v2463_v29  ;;  %v2544_v28 = vld [vmem:[#allocation3 + $0x5c4] ss:$8 sps:$4 sm:$0xff]   ;;  %v2539_v29 = vld [vmem:[#allocation3 + $0x2c0] ss:$8 sps:$4 sm:$0xff]  }
  0x92   :  { %1602 = vmatprep.subr.bf16.mxu0 %v2466_v30  ;;  %v2542_v30 = vld [vmem:[#allocation3 + $0x5c0] ss:$8 sps:$4 sm:$0xff]  }
  0x94   :  { %1480 = vmatpush1.bf16.msra.mxu1 %v2461_v32  ;;  %v2547_v32 = vld [vmem:[#allocation3 + $0x2d4] ss:$8 sps:$4 sm:$0xff]  }
  0x95   :  { %1603 = vmatpush1.bf16.msra.mxu0 %v2464_v33  ;;  %1490 = vmatprep.subr.bf16.mxu1 %v2469_v34  ;;  %v2550_v33 = vld [vmem:[#allocation3 + $0x5d4] ss:$8 sps:$4 sm:$0xff]   ;;  %v2545_v34 = vld [vmem:[#allocation3 + $0x2d0] ss:$8 sps:$4 sm:$0xff]  }
  0x96   :  { %1613 = vmatprep.subr.bf16.mxu0 %v2472_v35  ;;  %v2548_v35 = vld [vmem:[#allocation3 + $0x5d0] ss:$8 sps:$4 sm:$0xff]  }
  0x97   :  { %1482 = vmatmul.mubr.bf16.vlgmr.msra.gmra.mrb[0].mxu1 %v125_v39  ;;  %v2554_v39 = vld [vmem:[#allocation3 + $0x5e0] ss:$8 sps:$4 sm:$0xff]  }
  0x98   :  { %1605 = vmatmul.mubr.bf16.vlgmr.msra.gmra.mrb[0].mxu0 %v131_v50  ;;  %1491 = vmatpush1.bf16.msra.mxu1 %v2467_v38  ;;  %v2551_v38 = vld [vmem:[#allocation3 + $0x2e0] ss:$8 sps:$4 sm:$0xff]   ;;  %v2559_v50 = vld [vmem:[#allocation3 + $0x2f4] ss:$8 sps:$4 sm:$0xff]  }
  0x99   :  { %1614 = vmatpush1.bf16.msra.mxu0 %v2470_v40  ;;  %1492 = vmatprep.subr.bf16.mxu1 %v2475_v41  ;;  %v2562_v40 = vld [vmem:[#allocation3 + $0x5f4] ss:$8 sps:$4 sm:$0xff]   ;;  %v2557_v41 = vld [vmem:[#allocation3 + $0x2f0] ss:$8 sps:$4 sm:$0xff]  }
  0x9a   :  { %1615 = vmatprep.subr.bf16.mxu0 %v2478_v42  ;;  %1522 = vmatprep.mubr.bf16.mxu1 %v128_v43  ;;  %v2560_v42 = vld [vmem:[#allocation3 + $0x5f0] ss:$8 sps:$4 sm:$0xff]   ;;  %v2566_v43 = vld [vmem:[#allocation3 + $0x604] ss:$8 sps:$4 sm:$0xff]  }
  0x9b   :  { %1645 = vmatprep.mubr.bf16.mxu0 %v134_v45  ;;  %v127_v45 = vpack.c.bf16 %v2743_v18, %v2743_v18  ;;  %v2575_v18 = vld [vmem:[#allocation3 + $0x634] ss:$8 sps:$4 sm:$0xff]  }
  0x9c   :  { %1493 = vmatpush1.bf16.msra.mxu1 %v2473_v46  ;;  %v133_v46 = vpack.c.bf16 %v2764_v31, %v2764_v31  ;;  %v2578_v31 = vld [vmem:[#allocation3 + $0x644] ss:$8 sps:$4 sm:$0xff]  }
  0x9d   :  { %1616 = vmatpush1.bf16.msra.mxu0 %v2476_v47  ;;  %1494 = vmatprep.subr.bf16.mxu1 %v2481_v48  ;;  %v2564_v47 = vld [vmem:[#allocation3 + $0x600] ss:$8 sps:$4 sm:$0xff]   ;;  %v2569_v48 = vld [vmem:[#allocation3 + $0x614] ss:$8 sps:$4 sm:$0xff]  }
  0x9e   :  { %1617 = vmatprep.subr.bf16.mxu0 %v2484_v15  ;;  %v2567_v15 = vld [vmem:[#allocation3 + $0x610] ss:$8 sps:$4 sm:$0xff]  }
  0xa0   :  { %1495 = vmatpush1.bf16.msra.mxu1 %v2479_v49  ;;  %v2572_v49 = vld [vmem:[#allocation3 + $0x624] ss:$8 sps:$4 sm:$0xff]  }
  0xa1   :  { %1618 = vmatpush1.bf16.msra.mxu0 %v2482_v51  ;;  %1496 = vmatprep.subr.bf16.mxu1 %v2487_v52  ;;  %v2570_v51 = vld [vmem:[#allocation3 + $0x620] ss:$8 sps:$4 sm:$0xff]   ;;  %v2573_v52 = vld [vmem:[#allocation3 + $0x630] ss:$8 sps:$4 sm:$0xff]  }
  0xa2   :  { %1619 = vmatprep.subr.bf16.mxu0 %v2490_v53  ;;  %v2576_v53 = vld [vmem:[#allocation3 + $0x640] ss:$8 sps:$4 sm:$0xff]  }
  0xa4   :  { %1497 = vmatpush1.bf16.msra.mxu1 %v2485_v54  ;;  %v2581_v54 = vld [vmem:[#allocation3 + $0x654] ss:$8 sps:$4 sm:$0xff]  }
  0xa5   :  { %1620 = vmatpush1.bf16.msra.mxu0 %v2488_v55  ;;  %1498 = vmatprep.subr.bf16.mxu1 %v2493_v56  ;;  %v2663_v55 = vmov 65535  }
  0xa6   :  { %1621 = vmatprep.subr.bf16.mxu0 %v2496_v57  ;;  %v1400_v56 = vsel %vm1398_vm0, 4294967295, %v2663_v55  ;;  %v2584_v57 = vld [vmem:[#allocation3 + $0x664] ss:$8 sps:$4 sm:$0xff]  }
  0xa8   :  { %1499 = vmatpush1.bf16.msra.mxu1 %v2491_v58  ;;  %v2587_v58 = vld [vmem:[#allocation3 + $0x674] ss:$8 sps:$4 sm:$0x3f]  }
  0xa9   :  { %1622 = vmatpush1.bf16.msra.mxu0 %v2494_v59  ;;  %1500 = vmatprep.subr.bf16.mxu1 %v2499_v60  ;;  %v1401_v59 = vsel %vm1399_vm1, %v1400_v56, 0  ;;  %v2582_v60 = vld [vmem:[#allocation3 + $0x660] ss:$8 sps:$4 sm:$0xff]  }
  0xaa   :  { %1623 = vmatprep.subr.bf16.mxu0 %v2502_v61  ;;  %v2585_v61 = vld [vmem:[#allocation3 + $0x670] ss:$8 sps:$4 sm:$0x3f]  }
  0xac   :  { %1501 = vmatpush1.bf16.msra.mxu1 %v2497_v62  ;;  %v1406_v62 = vand.u32 %v2587_v58, %v1401_v59 }
  0xad   :  { %1624 = vmatpush1.bf16.msra.mxu0 %v2500_v63  ;;  %1502 = vmatprep.subr.bf16.mxu1 %v2505_v0  ;;  %v1403_v63 = vand.u32 %v2585_v61, %v1401_v59  ;;  %v1981_v0 = vld.sshfl [vmem:[%s2853_s0 + $0x18] sm:$0x3 pattern:$0x76325410] }
  0xae   :  { %1625 = vmatprep.subr.bf16.mxu0 %v2508_v1  ;;  %v135_v1 = vpack.c.bf16 %v1981_v0, %v1981_v0 }
  0xb0   :  { %1503 = vmatpush1.bf16.msra.mxu1 %v2503_v2  ;;  %v2588_v2 = vld [vmem:[%s2856_s3 + $0x40] sm:$0xff]  }
  0xb1   :  { %1626 = vmatpush1.bf16.msra.mxu0 %v2506_v4  ;;  %1504 = vmatprep.subr.bf16.mxu1 %v2511_v5  ;;  %v2589_v4 = vld [vmem:[%s2856_s3] sm:$0xff]   ;;  %v2590_v5 = vld [vmem:[%s2856_s3 + $0x48] sm:$0xff]  }
  0xb2   :  { %1627 = vmatprep.subr.bf16.mxu0 %v2514_v6  ;;  %v2591_v6 = vld [vmem:[%s2856_s3 + $0x8] sm:$0xff]  }
  0xb4   :  { %1505 = vmatpush1.bf16.msra.mxu1 %v2509_v7  ;;  %v2592_v7 = vld [vmem:[%s2856_s3 + $0x50] sm:$0xff]  }
  0xb5   :  { %1628 = vmatpush1.bf16.msra.mxu0 %v2512_v8  ;;  %1506 = vmatprep.subr.bf16.mxu1 %v2517_v9  ;;  %v2593_v8 = vld [vmem:[%s2856_s3 + $0x10] sm:$0xff]   ;;  %v2594_v9 = vld [vmem:[%s2856_s3 + $0x58] sm:$0xff]  }
  0xb6   :  { %1629 = vmatprep.subr.bf16.mxu0 %v2520_v10  ;;  %v2595_v10 = vld [vmem:[%s2856_s3 + $0x18] sm:$0xff]  }
  0xb8   :  { %1507 = vmatpush1.bf16.msra.mxu1 %v2515_v11  ;;  %v2596_v11 = vld [vmem:[%s2856_s3 + $0x60] sm:$0xff]  }
  0xb9   :  { %1630 = vmatpush1.bf16.msra.mxu0 %v2518_v12  ;;  %1508 = vmatprep.subr.bf16.mxu1 %v2523_v13  ;;  %v2597_v12 = vld [vmem:[%s2856_s3 + $0x20] sm:$0xff]   ;;  %v2598_v13 = vld [vmem:[%s2856_s3 + $0x68] sm:$0xff]  }
  0xba   :  { %1631 = vmatprep.subr.bf16.mxu0 %v2526_v14  ;;  %v2599_v14 = vld [vmem:[%s2856_s3 + $0x28] sm:$0xff]  }
  0xbc   :  { %1509 = vmatpush1.bf16.msra.mxu1 %v2521_v16  ;;  %v2600_v16 = vld [vmem:[%s2856_s3 + $0x70] sm:$0xff]  }
  0xbd   :  { %1632 = vmatpush1.bf16.msra.mxu0 %v2524_v17  ;;  %1510 = vmatprep.subr.bf16.mxu1 %v2529_v19  ;;  %v2601_v17 = vld [vmem:[%s2856_s3 + $0x30] sm:$0xff]   ;;  %v2602_v19 = vld [vmem:[%s2856_s3 + $0x78] sm:$0xff]  }
  0xbe   :  { %1633 = vmatprep.subr.bf16.mxu0 %v2532_v20  ;;  %v2603_v20 = vld [vmem:[%s2856_s3 + $0x38] sm:$0xff]  }
  0xc0   :  { %1511 = vmatpush1.bf16.msra.mxu1 %v2527_v21 }
  0xc1   :  { %1634 = vmatpush1.bf16.msra.mxu0 %v2530_v22  ;;  %1512 = vmatprep.subr.bf16.mxu1 %v2535_v23 }
  0xc2   :  { %1635 = vmatprep.subr.bf16.mxu0 %v2538_v24 }
  0xc4   :  { %1513 = vmatpush1.bf16.msra.mxu1 %v2533_v25  ;;  %v348_v25 = vsub.s32 0, %v2722_v44 }
  0xc5   :  { %1636 = vmatpush1.bf16.msra.mxu0 %v2536_v26  ;;  %1514 = vmatprep.subr.bf16.mxu1 %v2541_v27  ;;  %v344_v26 = vld [vmem:[%s2855_s2] sm:$0x3]  ;;  %v352_v27 = vsub.s32 1, %v2722_v44 }
  0xc6   :  { %1637 = vmatprep.subr.bf16.mxu0 %v2544_v28  ;;  %v349_v28 = vrot.slane %v344_v26, %v348_v25  ;;  %v1953_v44 = vld [vmem:[#allocation2] sm:$0x1] }
  0xc7   :  { %1956 = vperm.xlu0 %2272, %v1953_v44  }
  0xc8   :  { %1515 = vmatpush1.bf16.msra.mxu1 %v2539_v29  ;;  %v353_v29 = vrot.slane %v344_v26, %v352_v27 }
  0xc9   :  { %1638 = vmatpush1.bf16.msra.mxu0 %v2542_v30  ;;  %1516 = vmatprep.subr.bf16.mxu1 %v2547_v32 }
  0xca   :  { %1639 = vmatprep.subr.bf16.mxu0 %v2550_v33 }
  0xcc   :  { %1517 = vmatpush1.bf16.msra.mxu1 %v2545_v34 }
  0xcd   :  { %1640 = vmatpush1.bf16.msra.mxu0 %v2548_v35  ;;  %1518 = vmatprep.subr.bf16.mxu1 %v2553_v36 }
  0xce   :  { %1641 = vmatprep.subr.bf16.mxu0 %v2556_v37 }
  0xd0   :  { %1519 = vmatpush1.bf16.msra.mxu1 %v2551_v38 }
  0xd1   :  { %1642 = vmatpush1.bf16.msra.mxu0 %v2554_v39  ;;  %1520 = vmatprep.subr.bf16.mxu1 %v2559_v50 }
  0xd2   :  { %1643 = vmatprep.subr.bf16.mxu0 %v2562_v40 }
  0xd4   :  { %1521 = vmatpush1.bf16.msra.mxu1 %v2557_v41 }
  0xd5   :  { %1644 = vmatpush1.bf16.msra.mxu0 %v2560_v42  ;;  %2210 = vmatprep.subr.bf16.mxu1 %v2588_v2  ;;  %v2664_v42 = vmov 0.0  }
  0xd6   :  { %1654 = vmatprep.subr.bf16.mxu0 %v2566_v43 }
  0xd7   :  { %1523 = vmatmul.mubr.bf16.vlgmr.msra.gmra.mrb[0].mxu1 %v127_v45  ;;  %v2191_v45 = vld [vmem:[%s2857_s4] ss:$0 sm:$0xff]  ;;  %s2632_s4 = scalar_lea.vmem %s1973_s10, 16 }
  0xd8   :  { %1646 = vmatmul.mubr.bf16.vlgmr.msra.gmra.mrb[0].mxu0 %v133_v46  ;;  %2211 = vmatpush3.bf16.msra.mxu1 %v2589_v4  ;;  %p2633_p8 = scmp.ne.s32.totalorder %s1973_s10, %s2632_s4  ;;  %p2638_p10 = scmp.lt.s32.totalorder %s2636_s11, %s2632_s4 }
  0xd9   :  { %1655 = vmatpush1.bf16.msra.mxu0 %v2564_v47  ;;  %1686 = vmatprep.mubr.bf16.mxu0 %v2662_v3  ;;  %v2579_v3 = vld [vmem:[#allocation3 + $0x650] ss:$8 sps:$4 sm:$0xff]  }
  0xda   :  { %1656 = vmatprep.subr.bf16.mxu0 %v2569_v48  ;;  %2212 = vmatprep.subr.bf16.mxu1 %v2590_v5  ;;  %p2639_p11 = por %p2638_p10, %p2637_p9 }
  0xdc   :  { %2213 = vmatpush3.bf16.msra.mxu1 %v2591_v6  ;;  %p2640_p12 = pnand %p2639_p11, %p2633_p8 }
  0xdd   :  { %1657 = vmatpush1.bf16.msra.mxu0 %v2567_v15  ;;  %2214 = vmatprep.subr.bf16.mxu1 %v2592_v7 }
  0xde   :  { %1658 = vmatprep.subr.bf16.mxu0 %v2572_v49 }
  0xe0   :  { %2215 = vmatpush3.bf16.msra.mxu1 %v2593_v8 }
  0xe1   :  { %1659 = vmatpush1.bf16.msra.mxu0 %v2570_v51  ;;  %2216 = vmatprep.subr.bf16.mxu1 %v2594_v9 }
  0xe2   :  { %1660 = vmatprep.subr.bf16.mxu0 %v2575_v18  ;;  %v1875_v18 = vld [vmem:[%s2858_s5] sm:$0xff] }
  0xe4   :  { %2217 = vmatpush3.bf16.msra.mxu1 %v2595_v10 }
  0xe5   :  { %1661 = vmatpush1.bf16.msra.mxu0 %v2573_v52  ;;  %2218 = vmatprep.subr.bf16.mxu1 %v2596_v11 }
  0xe6   :  { %1662 = vmatprep.subr.bf16.mxu0 %v2578_v31 }
  0xe8   :  { %2219 = vmatpush3.bf16.msra.mxu1 %v2597_v12 }
  0xe9   :  { %1663 = vmatpush1.bf16.msra.mxu0 %v2576_v53  ;;  %2220 = vmatprep.subr.bf16.mxu1 %v2598_v13 }
  0xea   :  { %1664 = vmatprep.subr.bf16.mxu0 %v2581_v54 }
  0xec   :  { %2221 = vmatpush3.bf16.msra.mxu1 %v2599_v14 }
  0xed   :  { %1665 = vmatpush1.bf16.msra.mxu0 %v2579_v3  ;;  %2222 = vmatprep.subr.bf16.mxu1 %v2600_v16 }
  0xee   :  { %1666 = vmatprep.subr.bf16.mxu0 %v2584_v57 }
  0xf0   :  { %2223 = vmatpush3.bf16.msra.mxu1 %v2601_v17 }
  0xf1   :  { %1667 = vmatpush1.bf16.msra.mxu0 %v2582_v60  ;;  %2224 = vmatprep.subr.bf16.mxu1 %v2602_v19 }
  0xf2   :  { %1668 = vmatprep.subr.bf16.mxu0 %v1406_v62 }
  0xf4   :  { %2225 = vmatpush3.bf16.msra.mxu1 %v2603_v20 }
  0xf5   :  { %1669 = vmatpush1.bf16.msra.mxu0 %v1403_v63  ;;  %2234 = vmatprep.subr.mxu1 %v2664_v42 }
  0xf8   :  { %2190 = vmatmul.mubr.msk.bf16.vlgmr.msra.gmra.mrb[0].mxu0 %vm1394_vm2, %v135_v1 }
 0x146   :  { %v1957_v52 = vpop.permute.xlu0 %1956 }
 0x147   :  { %v1962_v31 = vrot.slane %v1957_v52, %v348_v25 }
 0x1aa   :  { %v1524_v21 = vpop.f32.mrb[0].mxu1 }
 0x1ab   :  { %v1526_v22 = vpop.f32.mrb[1].mxu1  ;;  %v2239_v30 = vadd.f32 %v1524_v21, %v349_v28 }
 0x1ac   :  { %v1528_v23 = vpop.f32.mrb[2].mxu1  ;;  %v2241_v32 = vadd.f32 %v1526_v22, %v353_v29 }
 0x1ad   :  { %v1529_v24 = vpop.f32.mrb[3].mxu1 }
 0x1cb   :  { %v1688_v33 = vpop.f32.mrb[0].mxu0 }
 0x1cc   :  { %v2240_v34 = vadd.f32 %v2239_v30, %v1688_v33  ;;  %v1690_v35 = vpop.f32.mrb[1].mxu0 }
 0x1cd   :  { %v2242_v36 = vadd.f32 %v2241_v32, %v1690_v35  ;;  %v1692_v37 = vpop.f32.mrb[2].mxu0 }
 0x1ce   :  { %2604 = vtanh.f32 %v2240_v34  ;;  %v1693_v38 = vpop.f32.mrb[3].mxu0 }
 0x1cf   :  { %2606 = vtanh.f32 %v2242_v36 }
 0x1d8   :  { %v2605_v39 = vpop.eup %2604 }
 0x1d9   :  { %v2607_v50 = vpop.eup %2606  ;;  %v1697_v41 = vpack.c.bf16 %v2605_v39, %v2605_v39 }
 0x1da   :  { %v1698_v40 = vpack.c.bf16 %v2607_v50, %v2607_v50 }
 0x1dc   :  { %1866 = vmatprep.mubr.bf16.mxu1 %v1698_v40 }
 0x1dd   :  { %1867 = vmatmul.mubr.bf16.vlgmr.msra.gmra.mrb[4].mxu1 %v1697_v41 }
 0x1de   :  { %2236 = vmatprep.mubr.msk.f32.mxu1 %vm2665_vm3, %v2664_v42 }
 0x2b0   :  { %v2226_v43 = vpop.f32.mrb[4].mxu1 }
 0x2b1   :  { %v2227_v46 = vpop.f32.mrb[5].mxu1 }
 0x2b2   :  { %v2228_v47 = vadd.f32 %v2227_v46, %v2226_v43  ;;  %v2229_v48 = vpop.f32.mrb[6].mxu1 }
 0x2b3   :  { %v2230_v15 = vpop.f32.mrb[7].mxu1 }
 0x2b4   :  { %v1869_v49 = vadd.f32 %v2228_v47, %v2191_v45 }
 0x2b6   :  { %2608 = vtanh.f32 %v1869_v49 }
 0x2c0   :  { %v2609_v51 = vpop.eup %2608 }
 0x2c1   :  { %2235 = vmatpush3.xpose.msk.msra.mxu1 %vm1876_vm4, %v2609_v51 }
 0x2c4   :  { %2237 = vmatmul.mubr.msk.f32.vlgmr.msra.gmra.mrb[8].mxu1 %vm1876_vm4, %v1875_v18 }
 0x397   :  { %v1949_v53 = vpop.f32.mrb[8].mxu1 }
 0x398   :  { %v1963_v54 = vadd.f32 %v1962_v31, %v1949_v53  ;;  %v2238_v55 = vpop.f32.mrb[9].mxu1 }
 0x39a   :  { %1965 = vst.msk [vmem:[#allocation6] sm:$0x1] %vm1964_vm5, %v1963_v54 }
 0x39b   :  { %2643 = shalt.err (!%p2640_p12)
}
 0x39c   :  { %s2644_s12 = scalar_lea.hbm %s2860_s7, 16 }
 0x39d   :  { %p2645_p13 = scmp.ne.s32.totalorder %s2860_s7, %s2644_s12  ;;  %p2648_p0 = scmp.lt.u32.totalorder %s2644_s12, %s2860_s7 }
 0x39f   :  { %p2650_p1 = pnand %p2648_p0, %p2645_p13 }
 0x3a1   :  { %2653 = shalt.err (!%p2650_p1)
}
 0x3a2   :  { %1975 = dma.vmem_to_hbm [thread:$0]  %s1973_s10, 16, %s2860_s7, [#allocation5]  }
 0x3a3   :  { %2656 = dma.done.wait [#allocation5], 16  }
 0x3a4   :  { %2657 = vsyncadd [#allocation5], 4294967280 }
 0x3a5   :  { %1979 = vsyncpa [#allocation4], 1 }
 0x3a6   :  { %1980 = vsyncpa [#allocation5], 1 }

</bundles_post_ra>
